<compile_context>
chip_gen: v7x
topology: tpu7x:2x2x1
jax: 0.10.0
libtpu: 0.0.40
codegen_flags: <defaults>
</compile_context>

<pallas_src>
import functools
import math

import numpy as np

import jax
import jax.numpy as jnp
from jax.experimental import pallas as pl
from jax.experimental.pallas import tpu as pltpu

P_HIGH = jax.lax.Precision.HIGHEST  # only used for the tiny temb matmul + reference


# ---------------------------------------------------------------------------
# Fused Pallas kernel (channel-major: (C, H*W) per batch element)
# ---------------------------------------------------------------------------
def _ghost_bottleneck_kernel(x_ref, t_ref, m_ref,
                             w1p_ref, b1p_ref, w1d_ref, b1d_ref,
                             w2pa_ref, w2pb_ref, b2p_ref, w2d_ref, b2d_ref,
                             o_ref, *, H, W):
    f32 = jnp.float32
    HW = H * W
    K = w1d_ref.shape[0]
    pad = (K - 1) // 2

    x = x_ref[0].astype(f32)                                    # (Cin, HW)

    def dw_conv(inp, w_ref, b_ref):
        """Depthwise KxK 'same' conv on channel-major (C, HW) data.

        Spatial shifts are lane rolls of the flattened image; out-of-image
        contributions are zeroed with precomputed (1, HW) boundary masks.
        """
        acc = jnp.zeros_like(inp)
        for kh in range(K):
            for kw in range(K):
                d = (kh - pad) * W + (kw - pad)                 # flattened offset
                if d == 0:
                    contrib = inp                               # center tap, no mask
                else:
                    shifted = pltpu.roll(inp, (-d) % HW, axis=1)
                    contrib = shifted * m_ref[kh, kw]           # (1, HW) mask
                acc = acc + contrib * w_ref[kh, kw].astype(f32)  # (C, 1) tap
        return acc + b_ref[...].astype(f32)

    # ---- ghost1: primary 1x1 conv + BN + ReLU, cheap depthwise + BN + ReLU ----
    x1 = jnp.dot(w1p_ref[...].astype(f32), x, preferred_element_type=f32)
    x1 = jnp.maximum(x1 + b1p_ref[...].astype(f32), 0.0)        # (init1, HW)
    x2 = jnp.maximum(dw_conv(x1, w1d_ref, b1d_ref), 0.0)        # (new1,  HW)

    init1 = x1.shape[0]
    mid = t_ref.shape[1]
    c2 = mid - init1                                            # channels taken from x2
    x2c = x2 if c2 == x2.shape[0] else x2[:c2]

    # ---- temb add: x += temb_proj(temb)[:, :, None, None] ----
    g1a = x1 + t_ref[0, :init1, :].astype(f32)                  # (init1, HW)
    g1b = x2c + t_ref[0, init1:mid, :].astype(f32)              # (c2,    HW)

    # ---- ghost2: primary 1x1 conv + BN (no ReLU) as split matmul, cheap dw + BN ----
    y1 = (jnp.dot(w2pa_ref[...].astype(f32), g1a, preferred_element_type=f32)
          + jnp.dot(w2pb_ref[...].astype(f32), g1b, preferred_element_type=f32)
          + b2p_ref[...].astype(f32))                           # (init2, HW)
    y2 = dw_conv(y1, w2d_ref, b2d_ref)                          # (new2,  HW)

    init2 = y1.shape[0]
    out_chs = o_ref.shape[1]
    c2o = out_chs - init2
    y2c = y2 if c2o == y2.shape[0] else y2[:c2o]

    # ---- identity shortcut; write the two ghost halves into disjoint channel
    #      ranges of the output (replaces concat + slice) ----
    o_ref[0, :init2, :] = (y1 + x_ref[0, :init2, :].astype(f32)).astype(o_ref.dtype)
    o_ref[0, init2:out_chs, :] = (
        y2c + x_ref[0, init2:out_chs, :].astype(f32)).astype(o_ref.dtype)


# ---------------------------------------------------------------------------
# Wrapper
# ---------------------------------------------------------------------------
def _dw_boundary_masks(H, W, K):
    """(K, K, 1, H*W) float masks: 1 where the shifted neighbor is inside the image."""
    pad = (K - 1) // 2
    hh = np.arange(H)[:, None]
    ww = np.arange(W)[None, :]
    m = np.zeros((K, K, 1, H * W), np.float32)
    for kh in range(K):
        for kw in range(K):
            dh, dw = kh - pad, kw - pad
            valid = ((hh + dh >= 0) & (hh + dh < H) &
                     (ww + dw >= 0) & (ww + dw < W))
            m[kh, kw, 0, :] = valid.reshape(-1).astype(np.float32)
    return m


def _replicated_spec(a):
    zeros = (0,) * a.ndim
    return pl.BlockSpec(a.shape, lambda n, _z=zeros: _z)


def ghost_bottleneck_v2(kp, x_nchw, temb):
    """kp: prepared kernel params; x_nchw: (N, Cin, H, W); temb: (N, tdim)."""
    N, in_chs, H, W = x_nchw.shape
    HW = H * W
    out_chs = in_chs                       # identity-shortcut config (in_chs == out_chs)
    mid = kp["t_b"].shape[0]
    K = kp["w1d"].shape[0]

    # temb_proj: Linear + exact (erf) GELU on a tiny (N, tdim) x (tdim, mid) -- plain JAX.
    t = jax.nn.gelu(jnp.matmul(temb, kp["t_w"], precision=P_HIGH) + kp["t_b"],
                    approximate=False)
    t = t.reshape(N, mid, 1).astype(x_nchw.dtype)

    x = x_nchw.reshape(N, in_chs, HW)      # channel-major, kernel-native (no transpose)
    masks = jnp.asarray(_dw_boundary_masks(H, W, K))

    out = pl.pallas_call(
        functools.partial(_ghost_bottleneck_kernel, H=H, W=W),
        out_shape=jax.ShapeDtypeStruct((N, out_chs, HW), x_nchw.dtype),
        grid=(N,),
        in_specs=[
            pl.BlockSpec((1, in_chs, HW), lambda n: (n, 0, 0)),   # x
            pl.BlockSpec((1, mid, 1), lambda n: (n, 0, 0)),       # temb pre-add
            _replicated_spec(masks),
            _replicated_spec(kp["w1p"]), _replicated_spec(kp["b1p"]),
            _replicated_spec(kp["w1d"]), _replicated_spec(kp["b1d"]),
            _replicated_spec(kp["w2pa"]), _replicated_spec(kp["w2pb"]),
            _replicated_spec(kp["b2p"]),
            _replicated_spec(kp["w2d"]), _replicated_spec(kp["b2d"]),
        ],
        out_specs=pl.BlockSpec((1, out_chs, HW), lambda n: (n, 0, 0)),
        compiler_params=pltpu.CompilerParams(
            dimension_semantics=("parallel",)),   # batch axis -> v7x megacore sharding
    )(x, t, masks,
      kp["w1p"], kp["b1p"], kp["w1d"], kp["b1d"],
      kp["w2pa"], kp["w2pb"], kp["b2p"], kp["w2d"], kp["b2d"])

    return out.reshape(N, out_chs, H, W)


# ---------------------------------------------------------------------------
# Parameters (deterministic, synthetic) — shapes follow the PyTorch __init__
# ---------------------------------------------------------------------------
def init_params(key, in_chs, mid_chs, out_chs, tdim, ratio=2, dw_size=3, eps=1e-5):
    init1 = math.ceil(mid_chs / ratio)
    new1 = init1 * (ratio - 1)
    init2 = math.ceil(out_chs / ratio)
    new2 = init2 * (ratio - 1)
    keys = iter(jax.random.split(key, 24))

    def nk():
        return next(keys)

    def bn_fold(c):
        gamma = 1.0 + 0.1 * jax.random.normal(nk(), (c,), jnp.float32)
        beta = 0.1 * jax.random.normal(nk(), (c,), jnp.float32)
        mean = jnp.zeros((c,), jnp.float32)   # running stats at init (eval mode)
        var = jnp.ones((c,), jnp.float32)
        scale = gamma / jnp.sqrt(var + eps)
        return scale, beta - mean * scale

    p = {"mid_chs": mid_chs, "out_chs": out_chs}
    # ghost1: primary 1x1 conv (in_chs -> init1) + BN + ReLU
    p["g1_pw_w"] = jax.random.normal(nk(), (in_chs, init1), jnp.float32) / math.sqrt(in_chs)
    p["g1_pw_scale"], p["g1_pw_bias"] = bn_fold(init1)
    # ghost1: cheap dw 3x3 conv (init1 -> new1, groups=init1) + BN + ReLU
    p["g1_dw_w"] = jax.random.normal(nk(), (dw_size, dw_size, new1), jnp.float32) / dw_size
    p["g1_dw_scale"], p["g1_dw_bias"] = bn_fold(new1)
    # temb_proj: Linear(tdim, mid_chs) + GELU
    p["t_w"] = jax.random.normal(nk(), (tdim, mid_chs), jnp.float32) / math.sqrt(tdim)
    p["t_b"] = 0.1 * jax.random.normal(nk(), (mid_chs,), jnp.float32)
    # ghost2: primary 1x1 conv (mid_chs -> init2) + BN (no relu)
    p["g2_pw_w"] = jax.random.normal(nk(), (mid_chs, init2), jnp.float32) / math.sqrt(mid_chs)
    p["g2_pw_scale"], p["g2_pw_bias"] = bn_fold(init2)
    # ghost2: cheap dw 3x3 conv (init2 -> new2, groups=init2) + BN (no relu)
    p["g2_dw_w"] = jax.random.normal(nk(), (dw_size, dw_size, new2), jnp.float32) / dw_size
    p["g2_dw_scale"], p["g2_dw_bias"] = bn_fold(new2)
    return p


def prepare_kernel_params(p):
    """Fold eval-mode BN into weights, transpose to channel-major, pre-split ghost2 pw."""
    f32 = jnp.float32
    init1 = p["g1_pw_w"].shape[1]
    mid = p["g2_pw_w"].shape[0]
    kp = {}
    # ghost1 primary 1x1: (Cout, Cin), BN scale folded into rows
    kp["w1p"] = (p["g1_pw_w"].T * p["g1_pw_scale"][:, None]).astype(f32)
    kp["b1p"] = p["g1_pw_bias"].reshape(-1, 1).astype(f32)
    # ghost1 cheap depthwise: (K, K, C, 1), BN scale folded per channel
    kp["w1d"] = (p["g1_dw_w"] * p["g1_dw_scale"][None, None, :]).astype(f32)[..., None]
    kp["b1d"] = p["g1_dw_bias"].reshape(-1, 1).astype(f32)
    # ghost2 primary 1x1: (Cout, mid) channel-major, split over the two ghost1 halves
    w2p_cm = (p["g2_pw_w"].T * p["g2_pw_scale"][:, None]).astype(f32)
    kp["w2pa"] = w2p_cm[:, :init1]
    kp["w2pb"] = w2p_cm[:, init1:mid]
    kp["b2p"] = p["g2_pw_bias"].reshape(-1, 1).astype(f32)
    # ghost2 cheap depthwise
    kp["w2d"] = (p["g2_dw_w"] * p["g2_dw_scale"][None, None, :]).astype(f32)[..., None]
    kp["b2d"] = p["g2_dw_bias"].reshape(-1, 1).astype(f32)
    # temb projection (used in plain JAX)
    kp["t_w"] = p["t_w"].astype(f32)
    kp["t_b"] = p["t_b"].astype(f32)
    return kp


# ---------------------------------------------------------------------------
# Pure-JAX reference (fp32, HIGHEST precision) for a numerical sanity check
# ---------------------------------------------------------------------------
def reference_forward(p, x_nchw, temb):
    x = jnp.transpose(x_nchw, (0, 2, 3, 1))
    res = x

    def pw(v, w, s, b, relu):
        y = jnp.einsum("nhwi,io->nhwo", v, w, precision=P_HIGH) * s + b
        return jnp.maximum(y, 0.0) if relu else y

    def dw(v, w, s, b, relu):
        C = v.shape[-1]
        K = w.shape[0]
        y = jax.lax.conv_general_dilated(
            v, w.reshape(K, K, 1, C), (1, 1), "SAME",
            dimension_numbers=("NHWC", "HWIO", "NHWC"),
            feature_group_count=C, precision=P_HIGH)
        y = y * s + b
        return jnp.maximum(y, 0.0) if relu else y

    x1 = pw(x, p["g1_pw_w"], p["g1_pw_scale"], p["g1_pw_bias"], True)
    x2 = dw(x1, p["g1_dw_w"], p["g1_dw_scale"], p["g1_dw_bias"], True)
    g1 = jnp.concatenate([x1, x2], -1)[..., :p["mid_chs"]]
    t = jax.nn.gelu(jnp.matmul(temb, p["t_w"], precision=P_HIGH) + p["t_b"],
                    approximate=False)
    g1 = g1 + t[:, None, None, :]
    y1 = pw(g1, p["g2_pw_w"], p["g2_pw_scale"], p["g2_pw_bias"], False)
    y2 = dw(y1, p["g2_dw_w"], p["g2_dw_scale"], p["g2_dw_bias"], False)
    g2 = jnp.concatenate([y1, y2], -1)[..., :p["out_chs"]]
    return jnp.transpose(g2 + res, (0, 3, 1, 2))


if __name__ == "__main__":
    in_chs, mid_chs, out_chs, tdim = 8, 16, 8, 32
    N, H, W = 2, 16, 16

    key = jax.random.PRNGKey(0)
    kx, kt, kparam = jax.random.split(key, 3)
    x = jax.random.normal(kx, (N, in_chs, H, W), jnp.float32)   # NCHW like PyTorch
    temb = jax.random.normal(kt, (N, tdim), jnp.float32)

    params = init_params(kparam, in_chs, mid_chs, out_chs, tdim)
    kparams = prepare_kernel_params(params)

    fwd = jax.jit(ghost_bottleneck_v2)
    out = jax.block_until_ready(fwd(kparams, x, temb))
    assert out.shape == (N, out_chs, H, W), out.shape

    ref = reference_forward(params, x, temb)
    max_abs_ref = float(jnp.max(jnp.abs(ref)))
    err = float(jnp.max(jnp.abs(out - ref)))
    # Kernel matmuls run at default MXU precision (possibly a single bf16 pass),
    # the reference at fp32 HIGHEST -> allow bf16-rounding-level differences.
    tol = max(1e-2, 5e-2 * max_abs_ref)
    if err > tol:
        raise AssertionError(f"mismatch vs reference: max abs err {err} (tol {tol})")
    print("KERNEL_OK")
</pallas_src>

<mosaic_0001>
module attributes {stable_mosaic.version = 11 : i64} {
  func.func @_ghost_bottleneck_kernel(%arg0: i32, %arg1: memref<1x8x256xf32, #tpu.memory_space<vmem>>, %arg2: memref<1x16x1xf32, #tpu.memory_space<vmem>>, %arg3: memref<3x3x1x256xf32, #tpu.memory_space<vmem>>, %arg4: memref<8x8xf32, #tpu.memory_space<vmem>>, %arg5: memref<8x1xf32, #tpu.memory_space<vmem>>, %arg6: memref<3x3x8x1xf32, #tpu.memory_space<vmem>>, %arg7: memref<8x1xf32, #tpu.memory_space<vmem>>, %arg8: memref<4x8xf32, #tpu.memory_space<vmem>>, %arg9: memref<4x8xf32, #tpu.memory_space<vmem>>, %arg10: memref<4x1xf32, #tpu.memory_space<vmem>>, %arg11: memref<3x3x4x1xf32, #tpu.memory_space<vmem>>, %arg12: memref<4x1xf32, #tpu.memory_space<vmem>>, %arg13: memref<1x8x256xf32, #tpu.memory_space<vmem>>) attributes {dimension_semantics = [#tpu.dimension_semantics<parallel>], iteration_bounds = array<i64: 2>, scalar_prefetch = 0 : i64, scratch_operands = 0 : i64, tpu.core_type = #tpu.core_type<tc>, window_params = [{transform_indices = @transform_0, window_bounds = array<i64: 1, 8, 256>}, {transform_indices = @transform_1, window_bounds = array<i64: 1, 16, 1>}, {pipeline_mode = #tpu.pipeline_mode<synchronous>, transform_indices = @transform_2, window_bounds = array<i64: 3, 3, 1, 256>}, {pipeline_mode = #tpu.pipeline_mode<synchronous>, transform_indices = @transform_3, window_bounds = array<i64: 8, 8>}, {pipeline_mode = #tpu.pipeline_mode<synchronous>, transform_indices = @transform_4, window_bounds = array<i64: 8, 1>}, {pipeline_mode = #tpu.pipeline_mode<synchronous>, transform_indices = @transform_5, window_bounds = array<i64: 3, 3, 8, 1>}, {pipeline_mode = #tpu.pipeline_mode<synchronous>, transform_indices = @transform_6, window_bounds = array<i64: 8, 1>}, {pipeline_mode = #tpu.pipeline_mode<synchronous>, transform_indices = @transform_7, window_bounds = array<i64: 4, 8>}, {pipeline_mode = #tpu.pipeline_mode<synchronous>, transform_indices = @transform_8, window_bounds = array<i64: 4, 8>}, {pipeline_mode = #tpu.pipeline_mode<synchronous>, transform_indices = @transform_9, window_bounds = array<i64: 4, 1>}, {pipeline_mode = #tpu.pipeline_mode<synchronous>, transform_indices = @transform_10, window_bounds = array<i64: 3, 3, 4, 1>}, {pipeline_mode = #tpu.pipeline_mode<synchronous>, transform_indices = @transform_11, window_bounds = array<i64: 4, 1>}, {transform_indices = @transform_12, window_bounds = array<i64: 1, 8, 256>}]} {
    %c0 = arith.constant 0 : index
    %c0_0 = arith.constant 0 : index
    %c0_1 = arith.constant 0 : index
    %0 = vector.load %arg1[%c0, %c0_0, %c0_1] : memref<1x8x256xf32, #tpu.memory_space<vmem>>, vector<1x8x256xf32>
    %1 = vector.shape_cast %0 : vector<1x8x256xf32> to vector<8x256xf32>
    %c0_2 = arith.constant 0 : index
    %c0_3 = arith.constant 0 : index
    %2 = vector.load %arg4[%c0_2, %c0_3] : memref<8x8xf32, #tpu.memory_space<vmem>>, vector<8x8xf32>
    %cst = arith.constant dense<0.000000e+00> : vector<8x256xf32>
    %3 = tpu.matmul %2, %1, %cst {dimension_numbers = #tpu.dot_dimension_numbers<[1], [0], [0], [1], [0, 0, 1, 1], [], []>} : vector<8x8xf32>, vector<8x256xf32>, vector<8x256xf32> -> vector<8x256xf32>
    %c0_4 = arith.constant 0 : index
    %c0_5 = arith.constant 0 : index
    %4 = vector.load %arg5[%c0_4, %c0_5] : memref<8x1xf32, #tpu.memory_space<vmem>>, vector<8x1xf32>
    %5 = vector.broadcast %4 : vector<8x1xf32> to vector<8x256xf32>
    %6 = arith.addf %3, %5 : vector<8x256xf32>
    %cst_6 = arith.constant 0.000000e+00 : f32
    %7 = vector.broadcast %cst_6 : f32 to vector<8x256xf32>
    %8 = arith.maximumf %6, %7 : vector<8x256xf32>
    %cst_7 = arith.constant 0.000000e+00 : f32
    %9 = vector.broadcast %cst_7 : f32 to vector<8x256xf32>
    %c17_i32 = arith.constant 17 : i32
    %10 = tpu.dynamic_rotate %8 by %c17_i32 dim 1 : vector<8x256xf32>, i32 -> vector<8x256xf32>
    %c0_8 = arith.constant 0 : index
    %c0_9 = arith.constant 0 : index
    %c0_10 = arith.constant 0 : index
    %c0_11 = arith.constant 0 : index
    %11 = vector.load %arg3[%c0_8, %c0_9, %c0_10, %c0_11] : memref<3x3x1x256xf32, #tpu.memory_space<vmem>>, vector<1x1x1x256xf32>
    %12 = vector.shape_cast %11 : vector<1x1x1x256xf32> to vector<1x256xf32>
    %13 = vector.broadcast %12 : vector<1x256xf32> to vector<8x256xf32>
    %14 = arith.mulf %10, %13 : vector<8x256xf32>
    %c0_12 = arith.constant 0 : index
    %c0_13 = arith.constant 0 : index
    %c0_14 = arith.constant 0 : index
    %c0_15 = arith.constant 0 : index
    %15 = vector.load %arg6[%c0_12, %c0_13, %c0_14, %c0_15] : memref<3x3x8x1xf32, #tpu.memory_space<vmem>>, vector<1x1x8x1xf32>
    %16 = vector.shape_cast %15 : vector<1x1x8x1xf32> to vector<8x1xf32>
    %17 = vector.broadcast %16 : vector<8x1xf32> to vector<8x256xf32>
    %18 = arith.mulf %14, %17 : vector<8x256xf32>
    %19 = arith.addf %9, %18 : vector<8x256xf32>
    %c16_i32 = arith.constant 16 : i32
    %20 = tpu.dynamic_rotate %8 by %c16_i32 dim 1 : vector<8x256xf32>, i32 -> vector<8x256xf32>
    %c0_16 = arith.constant 0 : index
    %c1 = arith.constant 1 : index
    %c0_17 = arith.constant 0 : index
    %c0_18 = arith.constant 0 : index
    %21 = vector.load %arg3[%c0_16, %c1, %c0_17, %c0_18] : memref<3x3x1x256xf32, #tpu.memory_space<vmem>>, vector<1x1x1x256xf32>
    %22 = vector.shape_cast %21 : vector<1x1x1x256xf32> to vector<1x256xf32>
    %23 = vector.broadcast %22 : vector<1x256xf32> to vector<8x256xf32>
    %24 = arith.mulf %20, %23 : vector<8x256xf32>
    %c0_19 = arith.constant 0 : index
    %c1_20 = arith.constant 1 : index
    %c0_21 = arith.constant 0 : index
    %c0_22 = arith.constant 0 : index
    %25 = vector.load %arg6[%c0_19, %c1_20, %c0_21, %c0_22] : memref<3x3x8x1xf32, #tpu.memory_space<vmem>>, vector<1x1x8x1xf32>
    %26 = vector.shape_cast %25 : vector<1x1x8x1xf32> to vector<8x1xf32>
    %27 = vector.broadcast %26 : vector<8x1xf32> to vector<8x256xf32>
    %28 = arith.mulf %24, %27 : vector<8x256xf32>
    %29 = arith.addf %19, %28 : vector<8x256xf32>
    %c15_i32 = arith.constant 15 : i32
    %30 = tpu.dynamic_rotate %8 by %c15_i32 dim 1 : vector<8x256xf32>, i32 -> vector<8x256xf32>
    %c0_23 = arith.constant 0 : index
    %c2 = arith.constant 2 : index
    %c0_24 = arith.constant 0 : index
    %c0_25 = arith.constant 0 : index
    %31 = vector.load %arg3[%c0_23, %c2, %c0_24, %c0_25] : memref<3x3x1x256xf32, #tpu.memory_space<vmem>>, vector<1x1x1x256xf32>
    %32 = vector.shape_cast %31 : vector<1x1x1x256xf32> to vector<1x256xf32>
    %33 = vector.broadcast %32 : vector<1x256xf32> to vector<8x256xf32>
    %34 = arith.mulf %30, %33 : vector<8x256xf32>
    %c0_26 = arith.constant 0 : index
    %c2_27 = arith.constant 2 : index
    %c0_28 = arith.constant 0 : index
    %c0_29 = arith.constant 0 : index
    %35 = vector.load %arg6[%c0_26, %c2_27, %c0_28, %c0_29] : memref<3x3x8x1xf32, #tpu.memory_space<vmem>>, vector<1x1x8x1xf32>
    %36 = vector.shape_cast %35 : vector<1x1x8x1xf32> to vector<8x1xf32>
    %37 = vector.broadcast %36 : vector<8x1xf32> to vector<8x256xf32>
    %38 = arith.mulf %34, %37 : vector<8x256xf32>
    %39 = arith.addf %29, %38 : vector<8x256xf32>
    %c1_i32 = arith.constant 1 : i32
    %40 = tpu.dynamic_rotate %8 by %c1_i32 dim 1 : vector<8x256xf32>, i32 -> vector<8x256xf32>
    %c1_30 = arith.constant 1 : index
    %c0_31 = arith.constant 0 : index
    %c0_32 = arith.constant 0 : index
    %c0_33 = arith.constant 0 : index
    %41 = vector.load %arg3[%c1_30, %c0_31, %c0_32, %c0_33] : memref<3x3x1x256xf32, #tpu.memory_space<vmem>>, vector<1x1x1x256xf32>
    %42 = vector.shape_cast %41 : vector<1x1x1x256xf32> to vector<1x256xf32>
    %43 = vector.broadcast %42 : vector<1x256xf32> to vector<8x256xf32>
    %44 = arith.mulf %40, %43 : vector<8x256xf32>
    %c1_34 = arith.constant 1 : index
    %c0_35 = arith.constant 0 : index
    %c0_36 = arith.constant 0 : index
    %c0_37 = arith.constant 0 : index
    %45 = vector.load %arg6[%c1_34, %c0_35, %c0_36, %c0_37] : memref<3x3x8x1xf32, #tpu.memory_space<vmem>>, vector<1x1x8x1xf32>
    %46 = vector.shape_cast %45 : vector<1x1x8x1xf32> to vector<8x1xf32>
    %47 = vector.broadcast %46 : vector<8x1xf32> to vector<8x256xf32>
    %48 = arith.mulf %44, %47 : vector<8x256xf32>
    %49 = arith.addf %39, %48 : vector<8x256xf32>
    %c1_38 = arith.constant 1 : index
    %c1_39 = arith.constant 1 : index
    %c0_40 = arith.constant 0 : index
    %c0_41 = arith.constant 0 : index
    %50 = vector.load %arg6[%c1_38, %c1_39, %c0_40, %c0_41] : memref<3x3x8x1xf32, #tpu.memory_space<vmem>>, vector<1x1x8x1xf32>
    %51 = vector.shape_cast %50 : vector<1x1x8x1xf32> to vector<8x1xf32>
    %52 = vector.broadcast %51 : vector<8x1xf32> to vector<8x256xf32>
    %53 = arith.mulf %8, %52 : vector<8x256xf32>
    %54 = arith.addf %49, %53 : vector<8x256xf32>
    %c255_i32 = arith.constant 255 : i32
    %55 = tpu.dynamic_rotate %8 by %c255_i32 dim 1 : vector<8x256xf32>, i32 -> vector<8x256xf32>
    %c1_42 = arith.constant 1 : index
    %c2_43 = arith.constant 2 : index
    %c0_44 = arith.constant 0 : index
    %c0_45 = arith.constant 0 : index
    %56 = vector.load %arg3[%c1_42, %c2_43, %c0_44, %c0_45] : memref<3x3x1x256xf32, #tpu.memory_space<vmem>>, vector<1x1x1x256xf32>
    %57 = vector.shape_cast %56 : vector<1x1x1x256xf32> to vector<1x256xf32>
    %58 = vector.broadcast %57 : vector<1x256xf32> to vector<8x256xf32>
    %59 = arith.mulf %55, %58 : vector<8x256xf32>
    %c1_46 = arith.constant 1 : index
    %c2_47 = arith.constant 2 : index
    %c0_48 = arith.constant 0 : index
    %c0_49 = arith.constant 0 : index
    %60 = vector.load %arg6[%c1_46, %c2_47, %c0_48, %c0_49] : memref<3x3x8x1xf32, #tpu.memory_space<vmem>>, vector<1x1x8x1xf32>
    %61 = vector.shape_cast %60 : vector<1x1x8x1xf32> to vector<8x1xf32>
    %62 = vector.broadcast %61 : vector<8x1xf32> to vector<8x256xf32>
    %63 = arith.mulf %59, %62 : vector<8x256xf32>
    %64 = arith.addf %54, %63 : vector<8x256xf32>
    %c241_i32 = arith.constant 241 : i32
    %65 = tpu.dynamic_rotate %8 by %c241_i32 dim 1 : vector<8x256xf32>, i32 -> vector<8x256xf32>
    %c2_50 = arith.constant 2 : index
    %c0_51 = arith.constant 0 : index
    %c0_52 = arith.constant 0 : index
    %c0_53 = arith.constant 0 : index
    %66 = vector.load %arg3[%c2_50, %c0_51, %c0_52, %c0_53] : memref<3x3x1x256xf32, #tpu.memory_space<vmem>>, vector<1x1x1x256xf32>
    %67 = vector.shape_cast %66 : vector<1x1x1x256xf32> to vector<1x256xf32>
    %68 = vector.broadcast %67 : vector<1x256xf32> to vector<8x256xf32>
    %69 = arith.mulf %65, %68 : vector<8x256xf32>
    %c2_54 = arith.constant 2 : index
    %c0_55 = arith.constant 0 : index
    %c0_56 = arith.constant 0 : index
    %c0_57 = arith.constant 0 : index
    %70 = vector.load %arg6[%c2_54, %c0_55, %c0_56, %c0_57] : memref<3x3x8x1xf32, #tpu.memory_space<vmem>>, vector<1x1x8x1xf32>
    %71 = vector.shape_cast %70 : vector<1x1x8x1xf32> to vector<8x1xf32>
    %72 = vector.broadcast %71 : vector<8x1xf32> to vector<8x256xf32>
    %73 = arith.mulf %69, %72 : vector<8x256xf32>
    %74 = arith.addf %64, %73 : vector<8x256xf32>
    %c240_i32 = arith.constant 240 : i32
    %75 = tpu.dynamic_rotate %8 by %c240_i32 dim 1 : vector<8x256xf32>, i32 -> vector<8x256xf32>
    %c2_58 = arith.constant 2 : index
    %c1_59 = arith.constant 1 : index
    %c0_60 = arith.constant 0 : index
    %c0_61 = arith.constant 0 : index
    %76 = vector.load %arg3[%c2_58, %c1_59, %c0_60, %c0_61] : memref<3x3x1x256xf32, #tpu.memory_space<vmem>>, vector<1x1x1x256xf32>
    %77 = vector.shape_cast %76 : vector<1x1x1x256xf32> to vector<1x256xf32>
    %78 = vector.broadcast %77 : vector<1x256xf32> to vector<8x256xf32>
    %79 = arith.mulf %75, %78 : vector<8x256xf32>
    %c2_62 = arith.constant 2 : index
    %c1_63 = arith.constant 1 : index
    %c0_64 = arith.constant 0 : index
    %c0_65 = arith.constant 0 : index
    %80 = vector.load %arg6[%c2_62, %c1_63, %c0_64, %c0_65] : memref<3x3x8x1xf32, #tpu.memory_space<vmem>>, vector<1x1x8x1xf32>
    %81 = vector.shape_cast %80 : vector<1x1x8x1xf32> to vector<8x1xf32>
    %82 = vector.broadcast %81 : vector<8x1xf32> to vector<8x256xf32>
    %83 = arith.mulf %79, %82 : vector<8x256xf32>
    %84 = arith.addf %74, %83 : vector<8x256xf32>
    %c239_i32 = arith.constant 239 : i32
    %85 = tpu.dynamic_rotate %8 by %c239_i32 dim 1 : vector<8x256xf32>, i32 -> vector<8x256xf32>
    %c2_66 = arith.constant 2 : index
    %c2_67 = arith.constant 2 : index
    %c0_68 = arith.constant 0 : index
    %c0_69 = arith.constant 0 : index
    %86 = vector.load %arg3[%c2_66, %c2_67, %c0_68, %c0_69] : memref<3x3x1x256xf32, #tpu.memory_space<vmem>>, vector<1x1x1x256xf32>
    %87 = vector.shape_cast %86 : vector<1x1x1x256xf32> to vector<1x256xf32>
    %88 = vector.broadcast %87 : vector<1x256xf32> to vector<8x256xf32>
    %89 = arith.mulf %85, %88 : vector<8x256xf32>
    %c2_70 = arith.constant 2 : index
    %c2_71 = arith.constant 2 : index
    %c0_72 = arith.constant 0 : index
    %c0_73 = arith.constant 0 : index
    %90 = vector.load %arg6[%c2_70, %c2_71, %c0_72, %c0_73] : memref<3x3x8x1xf32, #tpu.memory_space<vmem>>, vector<1x1x8x1xf32>
    %91 = vector.shape_cast %90 : vector<1x1x8x1xf32> to vector<8x1xf32>
    %92 = vector.broadcast %91 : vector<8x1xf32> to vector<8x256xf32>
    %93 = arith.mulf %89, %92 : vector<8x256xf32>
    %94 = arith.addf %84, %93 : vector<8x256xf32>
    %c0_74 = arith.constant 0 : index
    %c0_75 = arith.constant 0 : index
    %95 = vector.load %arg7[%c0_74, %c0_75] : memref<8x1xf32, #tpu.memory_space<vmem>>, vector<8x1xf32>
    %96 = vector.broadcast %95 : vector<8x1xf32> to vector<8x256xf32>
    %97 = arith.addf %94, %96 : vector<8x256xf32>
    %cst_76 = arith.constant 0.000000e+00 : f32
    %98 = vector.broadcast %cst_76 : f32 to vector<8x256xf32>
    %99 = arith.maximumf %97, %98 : vector<8x256xf32>
    %c0_77 = arith.constant 0 : index
    %c0_78 = arith.constant 0 : index
    %c0_79 = arith.constant 0 : index
    %100 = vector.load %arg2[%c0_77, %c0_78, %c0_79] : memref<1x16x1xf32, #tpu.memory_space<vmem>>, vector<1x8x1xf32>
    %101 = vector.shape_cast %100 : vector<1x8x1xf32> to vector<8x1xf32>
    %102 = vector.broadcast %101 : vector<8x1xf32> to vector<8x256xf32>
    %103 = arith.addf %8, %102 : vector<8x256xf32>
    %c0_80 = arith.constant 0 : index
    %c8 = arith.constant 8 : index
    %c0_81 = arith.constant 0 : index
    %104 = vector.load %arg2[%c0_80, %c8, %c0_81] : memref<1x16x1xf32, #tpu.memory_space<vmem>>, vector<1x8x1xf32>
    %105 = vector.shape_cast %104 : vector<1x8x1xf32> to vector<8x1xf32>
    %106 = vector.broadcast %105 : vector<8x1xf32> to vector<8x256xf32>
    %107 = arith.addf %99, %106 : vector<8x256xf32>
    %c0_82 = arith.constant 0 : index
    %c0_83 = arith.constant 0 : index
    %108 = vector.load %arg8[%c0_82, %c0_83] : memref<4x8xf32, #tpu.memory_space<vmem>>, vector<4x8xf32>
    %cst_84 = arith.constant dense<0.000000e+00> : vector<4x256xf32>
    %109 = tpu.matmul %108, %103, %cst_84 {dimension_numbers = #tpu.dot_dimension_numbers<[1], [0], [0], [1], [0, 0, 1, 1], [], []>} : vector<4x8xf32>, vector<8x256xf32>, vector<4x256xf32> -> vector<4x256xf32>
    %c0_85 = arith.constant 0 : index
    %c0_86 = arith.constant 0 : index
    %110 = vector.load %arg9[%c0_85, %c0_86] : memref<4x8xf32, #tpu.memory_space<vmem>>, vector<4x8xf32>
    %cst_87 = arith.constant dense<0.000000e+00> : vector<4x256xf32>
    %111 = tpu.matmul %110, %107, %cst_87 {dimension_numbers = #tpu.dot_dimension_numbers<[1], [0], [0], [1], [0, 0, 1, 1], [], []>} : vector<4x8xf32>, vector<8x256xf32>, vector<4x256xf32> -> vector<4x256xf32>
    %112 = arith.addf %109, %111 : vector<4x256xf32>
    %c0_88 = arith.constant 0 : index
    %c0_89 = arith.constant 0 : index
    %113 = vector.load %arg10[%c0_88, %c0_89] : memref<4x1xf32, #tpu.memory_space<vmem>>, vector<4x1xf32>
    %114 = vector.broadcast %113 : vector<4x1xf32> to vector<4x256xf32>
    %115 = arith.addf %112, %114 : vector<4x256xf32>
    %cst_90 = arith.constant 0.000000e+00 : f32
    %116 = vector.broadcast %cst_90 : f32 to vector<4x256xf32>
    %c17_i32_91 = arith.constant 17 : i32
    %117 = tpu.dynamic_rotate %115 by %c17_i32_91 dim 1 : vector<4x256xf32>, i32 -> vector<4x256xf32>
    %c0_92 = arith.constant 0 : index
    %c0_93 = arith.constant 0 : index
    %c0_94 = arith.constant 0 : index
    %c0_95 = arith.constant 0 : index
    %118 = vector.load %arg3[%c0_92, %c0_93, %c0_94, %c0_95] : memref<3x3x1x256xf32, #tpu.memory_space<vmem>>, vector<1x1x1x256xf32>
    %119 = vector.shape_cast %118 : vector<1x1x1x256xf32> to vector<1x256xf32>
    %120 = vector.broadcast %119 : vector<1x256xf32> to vector<4x256xf32>
    %121 = arith.mulf %117, %120 : vector<4x256xf32>
    %c0_96 = arith.constant 0 : index
    %c0_97 = arith.constant 0 : index
    %c0_98 = arith.constant 0 : index
    %c0_99 = arith.constant 0 : index
    %122 = vector.load %arg11[%c0_96, %c0_97, %c0_98, %c0_99] : memref<3x3x4x1xf32, #tpu.memory_space<vmem>>, vector<1x1x4x1xf32>
    %123 = vector.shape_cast %122 : vector<1x1x4x1xf32> to vector<4x1xf32>
    %124 = vector.broadcast %123 : vector<4x1xf32> to vector<4x256xf32>
    %125 = arith.mulf %121, %124 : vector<4x256xf32>
    %126 = arith.addf %116, %125 : vector<4x256xf32>
    %c16_i32_100 = arith.constant 16 : i32
    %127 = tpu.dynamic_rotate %115 by %c16_i32_100 dim 1 : vector<4x256xf32>, i32 -> vector<4x256xf32>
    %c0_101 = arith.constant 0 : index
    %c1_102 = arith.constant 1 : index
    %c0_103 = arith.constant 0 : index
    %c0_104 = arith.constant 0 : index
    %128 = vector.load %arg3[%c0_101, %c1_102, %c0_103, %c0_104] : memref<3x3x1x256xf32, #tpu.memory_space<vmem>>, vector<1x1x1x256xf32>
    %129 = vector.shape_cast %128 : vector<1x1x1x256xf32> to vector<1x256xf32>
    %130 = vector.broadcast %129 : vector<1x256xf32> to vector<4x256xf32>
    %131 = arith.mulf %127, %130 : vector<4x256xf32>
    %c0_105 = arith.constant 0 : index
    %c1_106 = arith.constant 1 : index
    %c0_107 = arith.constant 0 : index
    %c0_108 = arith.constant 0 : index
    %132 = vector.load %arg11[%c0_105, %c1_106, %c0_107, %c0_108] : memref<3x3x4x1xf32, #tpu.memory_space<vmem>>, vector<1x1x4x1xf32>
    %133 = vector.shape_cast %132 : vector<1x1x4x1xf32> to vector<4x1xf32>
    %134 = vector.broadcast %133 : vector<4x1xf32> to vector<4x256xf32>
    %135 = arith.mulf %131, %134 : vector<4x256xf32>
    %136 = arith.addf %126, %135 : vector<4x256xf32>
    %c15_i32_109 = arith.constant 15 : i32
    %137 = tpu.dynamic_rotate %115 by %c15_i32_109 dim 1 : vector<4x256xf32>, i32 -> vector<4x256xf32>
    %c0_110 = arith.constant 0 : index
    %c2_111 = arith.constant 2 : index
    %c0_112 = arith.constant 0 : index
    %c0_113 = arith.constant 0 : index
    %138 = vector.load %arg3[%c0_110, %c2_111, %c0_112, %c0_113] : memref<3x3x1x256xf32, #tpu.memory_space<vmem>>, vector<1x1x1x256xf32>
    %139 = vector.shape_cast %138 : vector<1x1x1x256xf32> to vector<1x256xf32>
    %140 = vector.broadcast %139 : vector<1x256xf32> to vector<4x256xf32>
    %141 = arith.mulf %137, %140 : vector<4x256xf32>
    %c0_114 = arith.constant 0 : index
    %c2_115 = arith.constant 2 : index
    %c0_116 = arith.constant 0 : index
    %c0_117 = arith.constant 0 : index
    %142 = vector.load %arg11[%c0_114, %c2_115, %c0_116, %c0_117] : memref<3x3x4x1xf32, #tpu.memory_space<vmem>>, vector<1x1x4x1xf32>
    %143 = vector.shape_cast %142 : vector<1x1x4x1xf32> to vector<4x1xf32>
    %144 = vector.broadcast %143 : vector<4x1xf32> to vector<4x256xf32>
    %145 = arith.mulf %141, %144 : vector<4x256xf32>
    %146 = arith.addf %136, %145 : vector<4x256xf32>
    %c1_i32_118 = arith.constant 1 : i32
    %147 = tpu.dynamic_rotate %115 by %c1_i32_118 dim 1 : vector<4x256xf32>, i32 -> vector<4x256xf32>
    %c1_119 = arith.constant 1 : index
    %c0_120 = arith.constant 0 : index
    %c0_121 = arith.constant 0 : index
    %c0_122 = arith.constant 0 : index
    %148 = vector.load %arg3[%c1_119, %c0_120, %c0_121, %c0_122] : memref<3x3x1x256xf32, #tpu.memory_space<vmem>>, vector<1x1x1x256xf32>
    %149 = vector.shape_cast %148 : vector<1x1x1x256xf32> to vector<1x256xf32>
    %150 = vector.broadcast %149 : vector<1x256xf32> to vector<4x256xf32>
    %151 = arith.mulf %147, %150 : vector<4x256xf32>
    %c1_123 = arith.constant 1 : index
    %c0_124 = arith.constant 0 : index
    %c0_125 = arith.constant 0 : index
    %c0_126 = arith.constant 0 : index
    %152 = vector.load %arg11[%c1_123, %c0_124, %c0_125, %c0_126] : memref<3x3x4x1xf32, #tpu.memory_space<vmem>>, vector<1x1x4x1xf32>
    %153 = vector.shape_cast %152 : vector<1x1x4x1xf32> to vector<4x1xf32>
    %154 = vector.broadcast %153 : vector<4x1xf32> to vector<4x256xf32>
    %155 = arith.mulf %151, %154 : vector<4x256xf32>
    %156 = arith.addf %146, %155 : vector<4x256xf32>
    %c1_127 = arith.constant 1 : index
    %c1_128 = arith.constant 1 : index
    %c0_129 = arith.constant 0 : index
    %c0_130 = arith.constant 0 : index
    %157 = vector.load %arg11[%c1_127, %c1_128, %c0_129, %c0_130] : memref<3x3x4x1xf32, #tpu.memory_space<vmem>>, vector<1x1x4x1xf32>
    %158 = vector.shape_cast %157 : vector<1x1x4x1xf32> to vector<4x1xf32>
    %159 = vector.broadcast %158 : vector<4x1xf32> to vector<4x256xf32>
    %160 = arith.mulf %115, %159 : vector<4x256xf32>
    %161 = arith.addf %156, %160 : vector<4x256xf32>
    %c255_i32_131 = arith.constant 255 : i32
    %162 = tpu.dynamic_rotate %115 by %c255_i32_131 dim 1 : vector<4x256xf32>, i32 -> vector<4x256xf32>
    %c1_132 = arith.constant 1 : index
    %c2_133 = arith.constant 2 : index
    %c0_134 = arith.constant 0 : index
    %c0_135 = arith.constant 0 : index
    %163 = vector.load %arg3[%c1_132, %c2_133, %c0_134, %c0_135] : memref<3x3x1x256xf32, #tpu.memory_space<vmem>>, vector<1x1x1x256xf32>
    %164 = vector.shape_cast %163 : vector<1x1x1x256xf32> to vector<1x256xf32>
    %165 = vector.broadcast %164 : vector<1x256xf32> to vector<4x256xf32>
    %166 = arith.mulf %162, %165 : vector<4x256xf32>
    %c1_136 = arith.constant 1 : index
    %c2_137 = arith.constant 2 : index
    %c0_138 = arith.constant 0 : index
    %c0_139 = arith.constant 0 : index
    %167 = vector.load %arg11[%c1_136, %c2_137, %c0_138, %c0_139] : memref<3x3x4x1xf32, #tpu.memory_space<vmem>>, vector<1x1x4x1xf32>
    %168 = vector.shape_cast %167 : vector<1x1x4x1xf32> to vector<4x1xf32>
    %169 = vector.broadcast %168 : vector<4x1xf32> to vector<4x256xf32>
    %170 = arith.mulf %166, %169 : vector<4x256xf32>
    %171 = arith.addf %161, %170 : vector<4x256xf32>
    %c241_i32_140 = arith.constant 241 : i32
    %172 = tpu.dynamic_rotate %115 by %c241_i32_140 dim 1 : vector<4x256xf32>, i32 -> vector<4x256xf32>
    %c2_141 = arith.constant 2 : index
    %c0_142 = arith.constant 0 : index
    %c0_143 = arith.constant 0 : index
    %c0_144 = arith.constant 0 : index
    %173 = vector.load %arg3[%c2_141, %c0_142, %c0_143, %c0_144] : memref<3x3x1x256xf32, #tpu.memory_space<vmem>>, vector<1x1x1x256xf32>
    %174 = vector.shape_cast %173 : vector<1x1x1x256xf32> to vector<1x256xf32>
    %175 = vector.broadcast %174 : vector<1x256xf32> to vector<4x256xf32>
    %176 = arith.mulf %172, %175 : vector<4x256xf32>
    %c2_145 = arith.constant 2 : index
    %c0_146 = arith.constant 0 : index
    %c0_147 = arith.constant 0 : index
    %c0_148 = arith.constant 0 : index
    %177 = vector.load %arg11[%c2_145, %c0_146, %c0_147, %c0_148] : memref<3x3x4x1xf32, #tpu.memory_space<vmem>>, vector<1x1x4x1xf32>
    %178 = vector.shape_cast %177 : vector<1x1x4x1xf32> to vector<4x1xf32>
    %179 = vector.broadcast %178 : vector<4x1xf32> to vector<4x256xf32>
    %180 = arith.mulf %176, %179 : vector<4x256xf32>
    %181 = arith.addf %171, %180 : vector<4x256xf32>
    %c240_i32_149 = arith.constant 240 : i32
    %182 = tpu.dynamic_rotate %115 by %c240_i32_149 dim 1 : vector<4x256xf32>, i32 -> vector<4x256xf32>
    %c2_150 = arith.constant 2 : index
    %c1_151 = arith.constant 1 : index
    %c0_152 = arith.constant 0 : index
    %c0_153 = arith.constant 0 : index
    %183 = vector.load %arg3[%c2_150, %c1_151, %c0_152, %c0_153] : memref<3x3x1x256xf32, #tpu.memory_space<vmem>>, vector<1x1x1x256xf32>
    %184 = vector.shape_cast %183 : vector<1x1x1x256xf32> to vector<1x256xf32>
    %185 = vector.broadcast %184 : vector<1x256xf32> to vector<4x256xf32>
    %186 = arith.mulf %182, %185 : vector<4x256xf32>
    %c2_154 = arith.constant 2 : index
    %c1_155 = arith.constant 1 : index
    %c0_156 = arith.constant 0 : index
    %c0_157 = arith.constant 0 : index
    %187 = vector.load %arg11[%c2_154, %c1_155, %c0_156, %c0_157] : memref<3x3x4x1xf32, #tpu.memory_space<vmem>>, vector<1x1x4x1xf32>
    %188 = vector.shape_cast %187 : vector<1x1x4x1xf32> to vector<4x1xf32>
    %189 = vector.broadcast %188 : vector<4x1xf32> to vector<4x256xf32>
    %190 = arith.mulf %186, %189 : vector<4x256xf32>
    %191 = arith.addf %181, %190 : vector<4x256xf32>
    %c239_i32_158 = arith.constant 239 : i32
    %192 = tpu.dynamic_rotate %115 by %c239_i32_158 dim 1 : vector<4x256xf32>, i32 -> vector<4x256xf32>
    %c2_159 = arith.constant 2 : index
    %c2_160 = arith.constant 2 : index
    %c0_161 = arith.constant 0 : index
    %c0_162 = arith.constant 0 : index
    %193 = vector.load %arg3[%c2_159, %c2_160, %c0_161, %c0_162] : memref<3x3x1x256xf32, #tpu.memory_space<vmem>>, vector<1x1x1x256xf32>
    %194 = vector.shape_cast %193 : vector<1x1x1x256xf32> to vector<1x256xf32>
    %195 = vector.broadcast %194 : vector<1x256xf32> to vector<4x256xf32>
    %196 = arith.mulf %192, %195 : vector<4x256xf32>
    %c2_163 = arith.constant 2 : index
    %c2_164 = arith.constant 2 : index
    %c0_165 = arith.constant 0 : index
    %c0_166 = arith.constant 0 : index
    %197 = vector.load %arg11[%c2_163, %c2_164, %c0_165, %c0_166] : memref<3x3x4x1xf32, #tpu.memory_space<vmem>>, vector<1x1x4x1xf32>
    %198 = vector.shape_cast %197 : vector<1x1x4x1xf32> to vector<4x1xf32>
    %199 = vector.broadcast %198 : vector<4x1xf32> to vector<4x256xf32>
    %200 = arith.mulf %196, %199 : vector<4x256xf32>
    %201 = arith.addf %191, %200 : vector<4x256xf32>
    %c0_167 = arith.constant 0 : index
    %c0_168 = arith.constant 0 : index
    %202 = vector.load %arg12[%c0_167, %c0_168] : memref<4x1xf32, #tpu.memory_space<vmem>>, vector<4x1xf32>
    %203 = vector.broadcast %202 : vector<4x1xf32> to vector<4x256xf32>
    %204 = arith.addf %201, %203 : vector<4x256xf32>
    %c0_169 = arith.constant 0 : index
    %c0_170 = arith.constant 0 : index
    %c0_171 = arith.constant 0 : index
    %205 = vector.load %arg1[%c0_169, %c0_170, %c0_171] : memref<1x8x256xf32, #tpu.memory_space<vmem>>, vector<1x4x256xf32>
    %206 = vector.shape_cast %205 : vector<1x4x256xf32> to vector<4x256xf32>
    %207 = arith.addf %115, %206 : vector<4x256xf32>
    %c0_172 = arith.constant 0 : index
    %c0_173 = arith.constant 0 : index
    %c0_174 = arith.constant 0 : index
    %208 = vector.load %arg13[%c0_172, %c0_173, %c0_174] : memref<1x8x256xf32, #tpu.memory_space<vmem>>, vector<1x4x256xf32>
    %209 = vector.shape_cast %208 : vector<1x4x256xf32> to vector<4x256xf32>
    %210 = vector.shape_cast %207 : vector<4x256xf32> to vector<1x4x256xf32>
    tpu.vector_store %arg13[%c0_172, %c0_173, %c0_174], %210 {strides = array<i32>} : memref<1x8x256xf32, #tpu.memory_space<vmem>>, vector<1x4x256xf32>,
    %c0_175 = arith.constant 0 : index
    %c4 = arith.constant 4 : index
    %c0_176 = arith.constant 0 : index
    %211 = vector.load %arg1[%c0_175, %c4, %c0_176] : memref<1x8x256xf32, #tpu.memory_space<vmem>>, vector<1x4x256xf32>
    %212 = vector.shape_cast %211 : vector<1x4x256xf32> to vector<4x256xf32>
    %213 = arith.addf %204, %212 : vector<4x256xf32>
    %c0_177 = arith.constant 0 : index
    %c4_178 = arith.constant 4 : index
    %c0_179 = arith.constant 0 : index
    %214 = vector.load %arg13[%c0_177, %c4_178, %c0_179] : memref<1x8x256xf32, #tpu.memory_space<vmem>>, vector<1x4x256xf32>
    %215 = vector.shape_cast %214 : vector<1x4x256xf32> to vector<4x256xf32>
    %216 = vector.shape_cast %213 : vector<4x256xf32> to vector<1x4x256xf32>
    tpu.vector_store %arg13[%c0_177, %c4_178, %c0_179], %216 {strides = array<i32>} : memref<1x8x256xf32, #tpu.memory_space<vmem>>, vector<1x4x256xf32>,
    return
  }
  func.func @transform_0(%arg0: i32) -> (i32, i32, i32) {
    %c0_i32 = arith.constant 0 : i32
    %c0_i32_0 = arith.constant 0 : i32
    %c0_i32_1 = arith.constant 0 : i32
    return %arg0, %c0_i32, %c0_i32_0 : i32, i32, i32
  }
  func.func @transform_1(%arg0: i32) -> (i32, i32, i32) {
    %c0_i32 = arith.constant 0 : i32
    %c0_i32_0 = arith.constant 0 : i32
    %c0_i32_1 = arith.constant 0 : i32
    return %arg0, %c0_i32, %c0_i32_0 : i32, i32, i32
  }
  func.func @transform_2(%arg0: i32) -> (i32, i32, i32, i32) {
    %c0_i32 = arith.constant 0 : i32
    %c0_i32_0 = arith.constant 0 : i32
    %c0_i32_1 = arith.constant 0 : i32
    %c0_i32_2 = arith.constant 0 : i32
    %c0_i32_3 = arith.constant 0 : i32
    return %c0_i32, %c0_i32_0, %c0_i32_1, %c0_i32_2 : i32, i32, i32, i32
  }
  func.func @transform_3(%arg0: i32) -> (i32, i32) {
    %c0_i32 = arith.constant 0 : i32
    %c0_i32_0 = arith.constant 0 : i32
    %c0_i32_1 = arith.constant 0 : i32
    return %c0_i32, %c0_i32_0 : i32, i32
  }
  func.func @transform_4(%arg0: i32) -> (i32, i32) {
    %c0_i32 = arith.constant 0 : i32
    %c0_i32_0 = arith.constant 0 : i32
    %c0_i32_1 = arith.constant 0 : i32
    return %c0_i32, %c0_i32_0 : i32, i32
  }
  func.func @transform_5(%arg0: i32) -> (i32, i32, i32, i32) {
    %c0_i32 = arith.constant 0 : i32
    %c0_i32_0 = arith.constant 0 : i32
    %c0_i32_1 = arith.constant 0 : i32
    %c0_i32_2 = arith.constant 0 : i32
    %c0_i32_3 = arith.constant 0 : i32
    return %c0_i32, %c0_i32_0, %c0_i32_1, %c0_i32_2 : i32, i32, i32, i32
  }
  func.func @transform_6(%arg0: i32) -> (i32, i32) {
    %c0_i32 = arith.constant 0 : i32
    %c0_i32_0 = arith.constant 0 : i32
    %c0_i32_1 = arith.constant 0 : i32
    return %c0_i32, %c0_i32_0 : i32, i32
  }
  func.func @transform_7(%arg0: i32) -> (i32, i32) {
    %c0_i32 = arith.constant 0 : i32
    %c0_i32_0 = arith.constant 0 : i32
    %c0_i32_1 = arith.constant 0 : i32
    return %c0_i32, %c0_i32_0 : i32, i32
  }
  func.func @transform_8(%arg0: i32) -> (i32, i32) {
    %c0_i32 = arith.constant 0 : i32
    %c0_i32_0 = arith.constant 0 : i32
    %c0_i32_1 = arith.constant 0 : i32
    return %c0_i32, %c0_i32_0 : i32, i32
  }
  func.func @transform_9(%arg0: i32) -> (i32, i32) {
    %c0_i32 = arith.constant 0 : i32
    %c0_i32_0 = arith.constant 0 : i32
    %c0_i32_1 = arith.constant 0 : i32
    return %c0_i32, %c0_i32_0 : i32, i32
  }
  func.func @transform_10(%arg0: i32) -> (i32, i32, i32, i32) {
    %c0_i32 = arith.constant 0 : i32
    %c0_i32_0 = arith.constant 0 : i32
    %c0_i32_1 = arith.constant 0 : i32
    %c0_i32_2 = arith.constant 0 : i32
    %c0_i32_3 = arith.constant 0 : i32
    return %c0_i32, %c0_i32_0, %c0_i32_1, %c0_i32_2 : i32, i32, i32, i32
  }
  func.func @transform_11(%arg0: i32) -> (i32, i32) {
    %c0_i32 = arith.constant 0 : i32
    %c0_i32_0 = arith.constant 0 : i32
    %c0_i32_1 = arith.constant 0 : i32
    return %c0_i32, %c0_i32_0 : i32, i32
  }
  func.func @transform_12(%arg0: i32) -> (i32, i32, i32) {
    %c0_i32 = arith.constant 0 : i32
    %c0_i32_0 = arith.constant 0 : i32
    %c0_i32_1 = arith.constant 0 : i32
    return %arg0, %c0_i32, %c0_i32_0 : i32, i32, i32
  }
}

</mosaic_0001>

<bundles_post_ra>
// kernel: ghost_bottleneck_v2.1
= control target key start
LH: loop header
LB: loop body
LE: loop exit
PB: predicated region body
PF: predicated region fallthrough
CT: control target
= control target key end

     0   :  { %s1387_s21 = smov 0   ;;  %s1813_s0 = inlined_call_operand.vmem [shape: f32[2,8,256], index: 0, kind: input, shape index: {}]   ;;  %s1814_s1 = inlined_call_operand.vmem [shape: f32[2,16,1], index: 1, kind: input, shape index: {}]   ;;  %s1815_s2 = inlined_call_operand.vmem [shape: f32[3,3,1,256], index: 2, kind: input, shape index: {}]   ;;  %s1816_s3 = inlined_call_operand.vmem [shape: f32[8,8], index: 3, kind: input, shape index: {}]   ;;  %s1817_s4 = inlined_call_operand.vmem [shape: f32[8,1], index: 4, kind: input, shape index: {}]   ;;  %s1818_s5 = inlined_call_operand.vmem [shape: f32[3,3,8,1], index: 5, kind: input, shape index: {}]   ;;  %s1819_s6 = inlined_call_operand.vmem [shape: f32[8,1], index: 6, kind: input, shape index: {}]   ;;  %s1820_s7 = inlined_call_operand.vmem [shape: f32[4,8], index: 7, kind: input, shape index: {}]   ;;  %s1821_s8 = inlined_call_operand.vmem [shape: f32[4,8], index: 8, kind: input, shape index: {}]   ;;  %s1822_s9 = inlined_call_operand.vmem [shape: f32[4,1], index: 9, kind: input, shape index: {}]   ;;  %s1823_s10 = inlined_call_operand.vmem [shape: f32[3,3,4,1], index: 10, kind: input, shape index: {}]   ;;  %s1824_s11 = inlined_call_operand.vmem [shape: f32[4,1], index: 11, kind: input, shape index: {}]   ;;  %s1825_s12 = inlined_call_operand.vmem [shape: f32[2,8,256], index: 12, kind: output, shape index: {}]  }
   0x1 LB: > { %s1240_s22 = sadd.s32 4294967295, %s1310_s21   ;;  %p1244_p0 = scmp.ge.s32.totalorder %s1310_s21, 1  ;;  %s1310_s21 = sphi %s1387_s21, %s22_s21  }
   0x2   : > { %p372_p1 = scmp.lt.s32.totalorder %s1310_s21, 3 }
   0x4   : > { %p373_p2 = pnand %p1244_p0, %p372_p1 }
   0x5   : > { %p419_p3 = scmp.lt.s32.totalorder (!%p373_p2), %s1240_s22, 1  ;;  %v437_v0 = vld [vmem:[%s1817_s4] sm:$0xff] (!%p373_p2)  ;;  %v1312_v1 = vmov (!%p373_p2), 0.0   ;;  %v1313_v2 = vmov (!%p373_p2), 0   ;;  %v1253_v3 = vld [vmem:[%s1818_s5 + $0x8] sm:$0xff] (!%p373_p2)  ;;  %v1255_v5 = vld [vmem:[%s1818_s5 + $0x10] sm:$0xff] (!%p373_p2)  ;;  %v524_v46 = vlaneseq (!%p373_p2) }
   0x6   : > { %376 = sbr.rel (%p373_p2) target bundleno = 792 (0x318), region = 68  ;;  %511 = vmatprep.mubr.f32.mxu0 (!%p373_p2), %v1312_v1  ;;  %1302 = vset.pattern.permute.xlu0 (!%p373_p2), %v1313_v2  ;;  %v543_v4 = vld [vmem:[%s1818_s5] sm:$0xff] (!%p373_p2)  ;;  %vm443_vm0 = vcmask (!%p373_p2), 64512   ;;  %v1257_v9 = vld [vmem:[%s1818_s5 + $0x18] sm:$0xff] (!%p373_p2)  ;;  %v1260_v11 = vld [vmem:[%s1818_s5 + $0x28] sm:$0xff] (!%p373_p2)  ;;  %s1314_s15 = smov (!%p373_p2), 15  }
   0x7   : > { %440 = vperm.xlu0 (!%p373_p2), %1302, %v437_v0   ;;  %1303 = vset.pattern.permute.xlu1 (!%p373_p2), %v1313_v2  ;;  %v436_v8 = vld [vmem:[%s1816_s3] sm:$0xff] (!%p373_p2)  ;;  %v1262_v12 = vld [vmem:[%s1818_s5 + $0x30] sm:$0xff] (!%p373_p2)  ;;  %v1264_v13 = vld [vmem:[%s1818_s5 + $0x38] sm:$0xff] (!%p373_p2)  ;;  %s1315_s17 = smov (!%p373_p2), 17   ;;  %s1316_s18 = smov (!%p373_p2), 113   ;;  %v532_v49 = vshrl.u32 (!%p373_p2), %v524_v46, 7 }
   0x8   : > { %579 = vperm.xlu1 (!%p373_p2), %1303, %v1253_v3   ;;  %890 = vmatprep.mubr.f32.mxu1 (!%p373_p2), %v1312_v1  ;;  %v1258_v10 = vld [vmem:[%s1818_s5 + $0x20] sm:$0xff] (!%p373_p2)  ;;  %s1317_s19 = smov (!%p373_p2), 16   ;;  %s1318_s20 = smov (!%p373_p2), 1   ;;  %v1271_v28 = vld [vmem:[%s1823_s10 + $0xc] sm:$0xf] (!%p373_p2)  ;;  %v1530_v50 = vand.u32 (!%p373_p2), 127, %v524_v46 }
   0x9   : > { %v1266_v14 = vld [vmem:[%s1818_s5 + $0x40] sm:$0xff] (!%p373_p2)  ;;  %s1828_s23 = smov (!%p373_p2), 112   ;;  %s1826_s24 = smov (!%p373_p2), 111   ;;  %v1270_v29 = vld [vmem:[%s1823_s10 + $0x8] sm:$0xf] (!%p373_p2)  ;;  %v1535_v54 = vsub.s32 (!%p373_p2), 0, %v532_v49 }
   0xa   : > { %v795_v23 = vld [vmem:[%s1819_s6] sm:$0xff] (!%p373_p2)  ;;  %v1273_v30 = vld [vmem:[%s1823_s10 + $0x14] sm:$0xf] (!%p373_p2)  ;;  %v1272_v31 = vld [vmem:[%s1823_s10 + $0x10] sm:$0xf] (!%p373_p2)  ;;  %v1537_v55 = vsub.s32 (!%p373_p2), 1, %v532_v49 }
   0xb   : > { %546 = vperm.xlu0 (!%p373_p2), %1302, %v543_v4   ;;  %v971_v24 = vld [vmem:[%s1822_s9] sm:$0xf] (!%p373_p2)  ;;  %v1269_v26 = vld [vmem:[%s1823_s10 + $0x4] sm:$0xf] (!%p373_p2)  ;;  %v1275_v32 = vld [vmem:[%s1823_s10 + $0x1c] sm:$0xf] (!%p373_p2) }
   0xc   : > { %612 = vperm.xlu1 (!%p373_p2), %1303, %v1255_v5   ;;  %v987_v27 = vld [vmem:[%s1823_s10] sm:$0xf] (!%p373_p2)  ;;  %v1274_v33 = vld [vmem:[%s1823_s10 + $0x18] sm:$0xf] (!%p373_p2)  ;;  %vm557_vm1 = vcmp.lt.s32.totalorder (!%p373_p2), %v1530_v50, 16  ;;  %vm526_vm2 = vcmp.lt.s32.totalorder (!%p373_p2), %v1530_v50, 17 }
   0xd   : > { %s1836_s22 = smov (!%p419_p3, %s1240_s22), 1  ;;  %v1276_v34 = vld [vmem:[%s1823_s10 + $0x20] sm:$0xf]  ;;  %v1256_v63 = vld [vmem:[%s1815_s2 + $0x6] sm:$0x3]  ;;  %vm623_vm3 = vcmp.lt.s32.totalorder %v1530_v50, 1 }
   0xe   : > { %s1406_s29 = sshll.u32 %s1836_s22, 4  ;;  %s1830_s22 = smov 127   ;;  %v1252_v53 = vld [vmem:[%s1815_s2 + $0x2] sm:$0x3]  ;;  %v529_v56 = vld [vmem:[%s1815_s2] sm:$0x3] }
   0xf   : > { %s1415_s16 = scalar_lea.vmem %s1813_s0, %s1406_s29  ;;  %645 = vperm.xlu0 %1302, %v1257_v9   ;;  %s428_s27 = scalar_lea.vmem %s1814_s1, %s1406_s29  ;;  %v1545_v57 = vrot.slane %v1252_v53, %v1535_v54  ;;  %v1548_v58 = vrot.slane %v1252_v53, %v1537_v55  ;;  %v1558_v0 = vrot.slane %v529_v56, %v1535_v54  ;;  %v1561_v2 = vrot.slane %v529_v56, %v1537_v55  ;;  %v1254_v3 = vld [vmem:[%s1815_s2 + $0x4] sm:$0x3] }
  0x10   : > { %v435_v6 = vld [vmem:[%s1415_s16 + $0x8] sm:$0xff]  ;;  %v434_v7 = vld [vmem:[%s1415_s16] sm:$0xff]  ;;  %656 = vperm.xlu1 %1303, %v1258_v10   ;;  %vm590_vm4 = vcmp.lt.s32.totalorder %v1530_v50, 15  ;;  %vm667_vm5 = vcmp.lt.s32.totalorder %v1530_v50, 127  ;;  %vm700_vm6 = vcmp.lt.s32.totalorder %v1530_v50, 113  ;;  %vm733_vm7 = vcmp.lt.s32.totalorder %v1530_v50, 112  ;;  %s1703_s25 = scalar_lea.vmem %s1825_s12, %s1406_s29 }
  0x11   : > { %447 = vmatprep.subr.mxu0 %v435_v6  ;;  %v813_v22 = vld [vmem:[%s428_s27 + $0x8] sm:$0xff]  ;;  %v805_v25 = vld [vmem:[%s428_s27] sm:$0xff]  ;;  %vm766_vm8 = vcmp.lt.s32.totalorder %v1530_v50, 111  ;;  %s1832_s29 = smov 127   ;;  %s1833_s26 = smov 112  }
  0x12   : > { %448 = vmatpush1.msra.mxu0 %v434_v7 }
  0x13   : > { %1251 = vmatmul.mubr.msk.f32.vlgmr.msra.gmra.mrb[0].mxu0 %vm443_vm0, %v436_v8  ;;  %689 = vperm.xlu0 %1302, %v1260_v11   ;;  %v1574_v8 = vrot.slane %v1256_v63, %v1535_v54  ;;  %v1577_v11 = vrot.slane %v1256_v63, %v1537_v55 }
  0x14   : > { %722 = vperm.xlu1 %1303, %v1262_v12   ;;  %v1259_v12 = vld [vmem:[%s1815_s2 + $0xa] sm:$0x3] }
  0x17   : > { %755 = vperm.xlu0 %1302, %v1264_v13   ;;  %v1584_v13 = vrot.slane %v1254_v3, %v1535_v54 }
  0x18   : > { %788 = vperm.xlu1 %1303, %v1266_v14   ;;  %v1587_v14 = vrot.slane %v1254_v3, %v1537_v55 }
  0x86   : > { %v441_v15 = vpop.permute.xlu0 %440 }
  0x87   : > { %v580_v35 = vpop.permute.xlu1 %579 }
  0x8a   : > { %v547_v36 = vpop.permute.xlu0 %546 }
  0x8b   : > { %v1514_v37 = vpop.permute.xlu1 %612 }
  0x8e   : > { %v1516_v38 = vpop.permute.xlu0 %645 }
  0x8f   : > { %v1518_v39 = vpop.permute.xlu1 %656 }
  0x92   : > { %v1520_v40 = vpop.permute.xlu0 %689 }
  0x93   : > { %v1522_v41 = vpop.permute.xlu1 %722 }
  0x96   : > { %v1524_v42 = vpop.permute.xlu0 %755 }
  0x97   : > { %v1526_v43 = vpop.permute.xlu1 %788 }
  0xe6   : > { %v513_v16 = vpop.f32.mrb[0].mxu0 }
  0xe7   : > { %v514_v17 = vadd.f32 %v513_v16, %v441_v15  ;;  %v515_v18 = vpop.f32.mrb[1].mxu0 }
  0xe8   : > { %v516_v20 = vadd.f32 %v515_v18, %v441_v15 }
  0xe9   : > { %v1441_v19 = vmax.f32 %v514_v17, 0.0 }
  0xea   : > { %v1451_v21 = vmax.f32 %v516_v20, 0.0 }
  0xeb   : > { %586 = vrot.lane.b32.xlu1 %v1441_v19, %s1314_s15  ;;  %520 = vrot.lane.b32.xlu0 %v1441_v19, %s1315_s17  ;;  %v659_v63 = vmul.f32 %v1518_v39, %v1441_v19 }
  0xef   : > { %696 = vrot.lane.b32.xlu1 %v1441_v19, %s1316_s18  ;;  %553 = vrot.lane.b32.xlu0 %v1441_v19, %s1317_s19 }
  0xf3   : > { %522 = vrot.lane.b32.xlu1 %v1451_v21, %s1315_s17  ;;  %619 = vrot.lane.b32.xlu0 %v1441_v19, %s1318_s20 }
  0xf7   : > { %555 = vrot.lane.b32.xlu1 %v1451_v21, %s1317_s19  ;;  %663 = vrot.lane.b32.xlu0 %v1441_v19, %s1830_s22 }
  0xfb   : > { %621 = vrot.lane.b32.xlu1 %v1451_v21, %s1318_s20  ;;  %729 = vrot.lane.b32.xlu0 %v1441_v19, %s1828_s23 }
  0xff   : > { %665 = vrot.lane.b32.xlu1 %v1451_v21, %s1830_s22  ;;  %588 = vrot.lane.b32.xlu0 %v1451_v21, %s1314_s15 }
 0x103   : > { %731 = vrot.lane.b32.xlu1 %v1451_v21, %s1828_s23  ;;  %762 = vrot.lane.b32.xlu0 %v1441_v19, %s1826_s24  ;;  %s1834_s23 = smov 111  }
 0x107   : > { %764 = vrot.lane.b32.xlu1 %v1451_v21, %s1826_s24  ;;  %698 = vrot.lane.b32.xlu0 %v1451_v21, %s1316_s18 }
 0x10b   : > { %816 = vperm.xlu1 %1303, %v813_v22   ;;  %798 = vperm.xlu0 %1302, %v795_v23   ;;  %v1597_v23 = vrot.slane %v1259_v12, %v1535_v54 }
 0x10f   : > { %974 = vperm.xlu1 %1303, %v971_v24   ;;  %808 = vperm.xlu0 %1302, %v805_v25   ;;  %v1600_v24 = vrot.slane %v1259_v12, %v1537_v55 }
 0x113   : > { %1009 = vperm.xlu1 %1303, %v1269_v26   ;;  %990 = vperm.xlu0 %1302, %v987_v27  }
 0x117   : > { %1047 = vperm.xlu1 %1303, %v1271_v28   ;;  %1028 = vperm.xlu0 %1302, %v1270_v29  }
 0x11b   : > { %1077 = vperm.xlu1 %1303, %v1273_v30   ;;  %1058 = vperm.xlu0 %1302, %v1272_v31  }
 0x11f   : > { %1115 = vperm.xlu1 %1303, %v1275_v32   ;;  %1096 = vperm.xlu0 %1302, %v1274_v33  }
 0x123   : > { %1134 = vperm.xlu0 %1302, %v1276_v34  }
 0x15d   : > { %v587_v44 = vpop.permute.xlu1 %586  ;;  %v521_v45 = vpop.permute.xlu0 %520 }
 0x161   : > { %v1528_v47 = vpop.permute.xlu1 %696  ;;  %v554_v48 = vpop.permute.xlu0 %553 }
 0x165   : > { %v523_v51 = vpop.permute.xlu1 %522  ;;  %v620_v52 = vpop.permute.xlu0 %619 }
 0x166   : > { %v527_v4 = vsel %vm526_vm2, %v521_v45, %v523_v51  ;;  %v528_v5 = vsel %vm526_vm2, %v523_v51, %v521_v45 }
 0x167   : > { %v541_v15 = vmul.f32 %v1558_v0, %v528_v5  ;;  %v542_v16 = vmul.f32 %v1561_v2, %v527_v4  ;;  %v660_v4 = vmul.f32 %v1518_v39, %v1451_v21 }
 0x169   : > { %v556_v59 = vpop.permute.xlu1 %555  ;;  %v664_v60 = vpop.permute.xlu0 %663  ;;  %v549_v31 = vmul.f32 %v547_v36, %v541_v15  ;;  %v550_v32 = vmul.f32 %v547_v36, %v542_v16  ;;  %v1261_v36 = vld [vmem:[%s1815_s2 + $0xc] sm:$0x3] }
 0x16a   : > { %v558_v61 = vsel %vm557_vm1, %v554_v48, %v556_v59  ;;  %v559_v62 = vsel %vm557_vm1, %v556_v59, %v554_v48  ;;  %v1630_v3 = vrot.slane %v1261_v36, %v1535_v54 }
 0x16b   : > { %v573_v6 = vmul.f32 %v1545_v57, %v559_v62  ;;  %v574_v7 = vmul.f32 %v1548_v58, %v558_v61 }
 0x16d   : > { %v622_v9 = vpop.permute.xlu1 %621  ;;  %v730_v10 = vpop.permute.xlu0 %729  ;;  %v582_v20 = vmul.f32 %v580_v35, %v573_v6  ;;  %v583_v22 = vmul.f32 %v580_v35, %v574_v7 }
 0x16e   : > { %v624_v17 = vsel %vm623_vm3, %v620_v52, %v622_v9  ;;  %v625_v18 = vsel %vm623_vm3, %v622_v9, %v620_v52 }
 0x16f   : > { %v639_v27 = vmul.f32 %v1574_v8, %v625_v18  ;;  %v640_v28 = vmul.f32 %v1577_v11, %v624_v17  ;;  %v584_v46 = vadd.f32 %v582_v20, %v549_v31  ;;  %v585_v48 = vadd.f32 %v583_v22, %v550_v32 }
 0x171   : > { %v666_v25 = vpop.permute.xlu1 %665  ;;  %v589_v26 = vpop.permute.xlu0 %588  ;;  %v649_v53 = vmul.f32 %v1516_v38, %v640_v28 }
 0x172   : > { %v591_v29 = vsel %vm590_vm4, %v587_v44, %v589_v26  ;;  %v592_v30 = vsel %vm590_vm4, %v589_v26, %v587_v44  ;;  %v668_v35 = vsel %vm667_vm5, %v664_v60, %v666_v25  ;;  %v669_v45 = vsel %vm667_vm5, %v666_v25, %v664_v60  ;;  %v1265_v26 = vld [vmem:[%s1815_s2 + $0x10] sm:$0x3] }
 0x173   : > { %v606_v33 = vmul.f32 %v1584_v13, %v592_v30  ;;  %v607_v34 = vmul.f32 %v1587_v14, %v591_v29  ;;  %v648_v44 = vmul.f32 %v1516_v38, %v639_v27  ;;  %v683_v56 = vmul.f32 %v1597_v23, %v668_v35 }
 0x174   : > { %v684_v59 = vmul.f32 %v1600_v24, %v669_v45  ;;  %v1633_v38 = vrot.slane %v1261_v36, %v1537_v55 }
 0x175   : > { %v615_v49 = vmul.f32 %v1514_v37, %v606_v33  ;;  %v616_v51 = vmul.f32 %v1514_v37, %v607_v34  ;;  %v763_v52 = vpop.permute.xlu0 %762  ;;  %v1263_v37 = vld [vmem:[%s1815_s2 + $0xe] sm:$0x3]  ;;  %v732_v62 = vpop.permute.xlu1 %731  ;;  %v692_v39 = vmul.f32 %v1520_v40, %v683_v56  ;;  %v1667_v33 = vrot.slane %v1265_v26, %v1535_v54 }
 0x176   : > { %v1639_v9 = vrot.slane %v1263_v37, %v1535_v54  ;;  %v1642_v12 = vrot.slane %v1263_v37, %v1537_v55  ;;  %v693_v17 = vmul.f32 %v1520_v40, %v684_v59  ;;  %v734_v22 = vsel %vm733_vm7, %v730_v10, %v732_v62 }
 0x177   : > { %v617_v60 = vadd.f32 %v615_v49, %v584_v46  ;;  %v618_v61 = vadd.f32 %v616_v51, %v585_v48  ;;  %v735_v25 = vsel %vm733_vm7, %v732_v62, %v730_v10  ;;  %v1670_v34 = vrot.slane %v1265_v26, %v1537_v55 }
 0x178   : > { %v749_v32 = vmul.f32 %v1639_v9, %v734_v22  ;;  %v750_v10 = vmul.f32 %v1642_v12, %v735_v25  ;;  %v1141_v25 = vld [vmem:[%s1824_s11] sm:$0xf] }
 0x179   : > { %v650_v5 = vadd.f32 %v648_v44, %v617_v60  ;;  %v651_v6 = vadd.f32 %v649_v53, %v618_v61  ;;  %v699_v7 = vpop.permute.xlu0 %698  ;;  %v765_v28 = vpop.permute.xlu1 %764 }
 0x17a   : > { %v701_v15 = vsel %vm700_vm6, %v1528_v47, %v699_v7  ;;  %v702_v16 = vsel %vm700_vm6, %v699_v7, %v1528_v47  ;;  %v767_v35 = vsel %vm766_vm8, %v763_v52, %v765_v28  ;;  %v768_v45 = vsel %vm766_vm8, %v765_v28, %v763_v52 }
 0x17b   : > { %v662_v18 = vadd.f32 %v660_v4, %v651_v6  ;;  %v661_v20 = vadd.f32 %v659_v63, %v650_v5  ;;  %v716_v27 = vmul.f32 %v1630_v3, %v701_v15  ;;  %v717_v47 = vmul.f32 %v1633_v38, %v702_v16  ;;  %v822_v6 = vld [vmem:[%s1821_s8] sm:$0xf] }
 0x17c   : > { %v759_v49 = vmul.f32 %v1524_v42, %v750_v10  ;;  %v782_v51 = vmul.f32 %v1667_v33, %v767_v35  ;;  %v783_v54 = vmul.f32 %v1670_v34, %v768_v45  ;;  %v821_v15 = vld [vmem:[%s1820_s7] sm:$0xf] }
 0x17d   : > { %v695_v40 = vadd.f32 %v693_v17, %v662_v18  ;;  %v694_v29 = vadd.f32 %v692_v39, %v661_v20  ;;  %v725_v30 = vmul.f32 %v1522_v41, %v716_v27  ;;  %v726_v31 = vmul.f32 %v1522_v41, %v717_v47 }
 0x17e   : > { %v758_v41 = vmul.f32 %v1524_v42, %v749_v32  ;;  %v791_v55 = vmul.f32 %v1526_v43, %v782_v51  ;;  %v792_v53 = vmul.f32 %v1526_v43, %v783_v54 }
 0x17f   : > { %v727_v46 = vadd.f32 %v725_v30, %v694_v29  ;;  %v728_v48 = vadd.f32 %v726_v31, %v695_v40 }
 0x181   : > { %v761_v36 = vadd.f32 %v759_v49, %v728_v48  ;;  %v760_v44 = vadd.f32 %v758_v41, %v727_v46 }
 0x183   : > { %v794_v56 = vadd.f32 %v792_v53, %v761_v36  ;;  %v793_v59 = vadd.f32 %v791_v55, %v760_v44 }
 0x18a   : > { %v799_v60 = vpop.permute.xlu0 %798  ;;  %v817_v63 = vpop.permute.xlu1 %816 }
 0x18b   : > { %v801_v52 = vadd.f32 %v799_v60, %v793_v59  ;;  %v802_v61 = vadd.f32 %v799_v60, %v794_v56 }
 0x18d   : > { %v803_v37 = vmax.f32 %v801_v52, 0.0  ;;  %v804_v62 = vmax.f32 %v802_v61, 0.0 }
 0x18e   : > { %v809_v4 = vpop.permute.xlu0 %808  ;;  %v975_v16 = vpop.permute.xlu1 %974 }
 0x18f   : > { %v820_v42 = vadd.f32 %v817_v63, %v804_v62  ;;  %v819_v5 = vadd.f32 %v817_v63, %v803_v37  ;;  %v812_v7 = vadd.f32 %v809_v4, %v1451_v21  ;;  %v811_v43 = vadd.f32 %v809_v4, %v1441_v19  ;;  %v1149_v21 = vld [vmem:[%s1415_s16] sm:$0xf]  ;;  %v1150_v19 = vld [vmem:[%s1415_s16 + $0x8] sm:$0xf] }
 0x191   : > { %826 = vmatprep.subr.mxu1 %v820_v42 }
 0x192   : > { %827 = vmatpush1.msra.mxu1 %v819_v5  ;;  %v991_v26 = vpop.permute.xlu0 %990  ;;  %v1010_v27 = vpop.permute.xlu1 %1009 }
 0x193   : > { %1267 = vmatmul.mubr.msk.f32.vlgmr.msra.gmra.mrb[0].mxu1 %vm443_vm0, %v822_v6  ;;  %900 = vmatprep.subr.mxu1 %v812_v7 }
 0x194   : > { %901 = vmatpush1.msra.mxu1 %v811_v43  ;;  %964 = vmatprep.mubr.f32.mxu1 %v1312_v1 }
 0x196   : > { %v1029_v47 = vpop.permute.xlu0 %1028  ;;  %v1048_v28 = vpop.permute.xlu1 %1047 }
 0x19a   : > { %v1059_v40 = vpop.permute.xlu0 %1058  ;;  %v1078_v29 = vpop.permute.xlu1 %1077 }
 0x19b   : > { %1268 = vmatmul.mubr.msk.f32.vlgmr.msra.gmra.mrb[0].mxu1 %vm443_vm0, %v821_v15 }
 0x19e   : > { %v1744_v30 = vpop.permute.xlu0 %1096  ;;  %v1746_v31 = vpop.permute.xlu1 %1115 }
 0x1a2   : > { %v1748_v32 = vpop.permute.xlu0 %1134 }
 0x26e   : > { %v966_v39 = vpop.f32.mrb[0].mxu1 }
 0x26f   : > { %v1694_v17 = vadd.f32 %v975_v16, %v966_v39  ;;  %v968_v18 = vpop.f32.mrb[1].mxu1 }
 0x270   : > { %v1697_v20 = vadd.f32 %v975_v16, %v968_v18 }
 0x271   : > { %1016 = vrot.lane.b32.xlu0 %v1694_v17, %s1314_s15  ;;  %979 = vrot.lane.b32.xlu1 %v1694_v17, %s1315_s17  ;;  %v1151_v1 = vadd.f32 %v1149_v21, %v1694_v17 }
 0x272   : > { %v1152_v22 = vadd.f32 %v1150_v19, %v1697_v20 }
 0x273   : > { %1153 = vst [vmem:[%s1703_s25] sm:$0xf] %v1151_v1 }
 0x274   : > { %1154 = vst [vmem:[%s1703_s25 + $0x8] sm:$0xf] %v1152_v22 }
 0x275   : > { %1084 = vrot.lane.b32.xlu0 %v1694_v17, %s1316_s18  ;;  %997 = vrot.lane.b32.xlu1 %v1694_v17, %s1317_s19 }
 0x279   : > { %1035 = vrot.lane.b32.xlu1 %v1694_v17, %s1318_s20  ;;  %981 = vrot.lane.b32.xlu0 %v1697_v20, %s1315_s17 }
 0x27d   : > { %1065 = vrot.lane.b32.xlu1 %v1694_v17, %s1832_s29  ;;  %999 = vrot.lane.b32.xlu0 %v1697_v20, %s1317_s19 }
 0x281   : > { %1103 = vrot.lane.b32.xlu1 %v1694_v17, %s1833_s26  ;;  %1037 = vrot.lane.b32.xlu0 %v1697_v20, %s1318_s20 }
 0x285   : > { %1018 = vrot.lane.b32.xlu1 %v1697_v20, %s1314_s15  ;;  %1067 = vrot.lane.b32.xlu0 %v1697_v20, %s1832_s29 }
 0x289   : > { %1122 = vrot.lane.b32.xlu1 %v1694_v17, %s1834_s23  ;;  %1105 = vrot.lane.b32.xlu0 %v1697_v20, %s1833_s26 }
 0x28d   : > { %1086 = vrot.lane.b32.xlu1 %v1697_v20, %s1316_s18  ;;  %1124 = vrot.lane.b32.xlu0 %v1697_v20, %s1834_s23 }
 0x291   : > { %1144 = vperm.xlu1 %1303, %v1141_v25  }
 0x2e3   : > { %v1017_v10 = vpop.permute.xlu0 %1016  ;;  %v980_v35 = vpop.permute.xlu1 %979 }
 0x2e7   : > { %v1085_v45 = vpop.permute.xlu0 %1084  ;;  %v998_v46 = vpop.permute.xlu1 %997 }
 0x2eb   : > { %v1036_v48 = vpop.permute.xlu1 %1035  ;;  %v982_v41 = vpop.permute.xlu0 %981 }
 0x2ec   : > { %v983_v54 = vsel %vm526_vm2, %v980_v35, %v982_v41  ;;  %v984_v36 = vsel %vm526_vm2, %v982_v41, %v980_v35 }
 0x2ed   : > { %v985_v53 = vmul.f32 %v984_v36, %v1558_v0  ;;  %v986_v56 = vmul.f32 %v983_v54, %v1561_v2 }
 0x2ef   : > { %v1066_v49 = vpop.permute.xlu1 %1065  ;;  %v1000_v51 = vpop.permute.xlu0 %999  ;;  %v993_v63 = vmul.f32 %v991_v26, %v985_v53  ;;  %v994_v4 = vmul.f32 %v991_v26, %v986_v56 }
 0x2f0   : > { %v1001_v44 = vsel %vm557_vm1, %v998_v46, %v1000_v51  ;;  %v1002_v55 = vsel %vm557_vm1, %v1000_v51, %v998_v46  ;;  %v1061_v46 = vmul.f32 %v1059_v40, %v1694_v17 }
 0x2f1   : > { %v1003_v59 = vmul.f32 %v1002_v55, %v1545_v57  ;;  %v1004_v60 = vmul.f32 %v1001_v44, %v1548_v58 }
 0x2f3   : > { %v1104_v52 = vpop.permute.xlu1 %1103  ;;  %v1038_v61 = vpop.permute.xlu0 %1037  ;;  %v1012_v42 = vmul.f32 %v1010_v27, %v1003_v59  ;;  %v1013_v5 = vmul.f32 %v1010_v27, %v1004_v60 }
 0x2f4   : > { %v1039_v37 = vsel %vm623_vm3, %v1036_v48, %v1038_v61  ;;  %v1040_v62 = vsel %vm623_vm3, %v1038_v61, %v1036_v48  ;;  %v1062_v48 = vmul.f32 %v1059_v40, %v1697_v20 }
 0x2f5   : > { %v1041_v2 = vmul.f32 %v1040_v62, %v1574_v8  ;;  %v1042_v57 = vmul.f32 %v1039_v37, %v1577_v11  ;;  %v1014_v21 = vadd.f32 %v1012_v42, %v993_v63  ;;  %v1015_v8 = vadd.f32 %v1013_v5, %v994_v4  ;;  %v1156_v63 = vld [vmem:[%s1415_s16 + $0x8] sm:$0xf0] }
 0x2f6   : > { %v1160_v5 = vrot.slane %v1156_v63, 4 }
 0x2f7   : > { %v1019_v6 = vpop.permute.xlu1 %1018  ;;  %v1068_v0 = vpop.permute.xlu0 %1067  ;;  %v1050_v25 = vmul.f32 %v1048_v28, %v1041_v2  ;;  %v1051_v26 = vmul.f32 %v1048_v28, %v1042_v57 }
 0x2f8   : > { %v1020_v58 = vsel %vm590_vm4, %v1017_v10, %v1019_v6  ;;  %v1021_v7 = vsel %vm590_vm4, %v1019_v6, %v1017_v10  ;;  %v1069_v16 = vsel %vm667_vm5, %v1066_v49, %v1068_v0  ;;  %v1070_v39 = vsel %vm667_vm5, %v1068_v0, %v1066_v49 }
 0x2f9   : > { %v1022_v43 = vmul.f32 %v1021_v7, %v1584_v13  ;;  %v1023_v15 = vmul.f32 %v1020_v58, %v1587_v14  ;;  %v1071_v1 = vmul.f32 %v1069_v16, %v1597_v23  ;;  %v1072_v22 = vmul.f32 %v1070_v39, %v1600_v24 }
 0x2fb   : > { %v1031_v18 = vmul.f32 %v1029_v47, %v1022_v43  ;;  %v1032_v11 = vmul.f32 %v1029_v47, %v1023_v15  ;;  %v1123_v19 = vpop.permute.xlu1 %1122  ;;  %v1106_v14 = vpop.permute.xlu0 %1105  ;;  %v1080_v49 = vmul.f32 %v1078_v29, %v1071_v1  ;;  %v1081_v51 = vmul.f32 %v1078_v29, %v1072_v22 }
 0x2fc   : > { %v1107_v17 = vsel %vm733_vm7, %v1104_v52, %v1106_v14  ;;  %v1108_v20 = vsel %vm733_vm7, %v1106_v14, %v1104_v52 }
 0x2fd   : > { %v1033_v13 = vadd.f32 %v1031_v18, %v1014_v21  ;;  %v1034_v27 = vadd.f32 %v1032_v11, %v1015_v8  ;;  %v1109_v53 = vmul.f32 %v1107_v17, %v1639_v9 }
 0x2ff   : > { %v1052_v10 = vadd.f32 %v1050_v25, %v1033_v13  ;;  %v1053_v35 = vadd.f32 %v1051_v26, %v1034_v27  ;;  %v1087_v41 = vpop.permute.xlu1 %1086  ;;  %v1125_v55 = vpop.permute.xlu0 %1124  ;;  %v1118_v52 = vmul.f32 %v1746_v31, %v1109_v53 }
 0x300   : > { %v1088_v47 = vsel %vm700_vm6, %v1085_v45, %v1087_v41  ;;  %v1089_v23 = vsel %vm700_vm6, %v1087_v41, %v1085_v45  ;;  %v1127_v56 = vsel %vm766_vm8, %v1125_v55, %v1123_v19 }
 0x301   : > { %v1063_v24 = vadd.f32 %v1061_v46, %v1052_v10  ;;  %v1064_v28 = vadd.f32 %v1062_v48, %v1053_v35  ;;  %v1090_v54 = vmul.f32 %v1088_v47, %v1630_v3  ;;  %v1091_v36 = vmul.f32 %v1089_v23, %v1633_v38 }
 0x302   : > { %v1110_v3 = vmul.f32 %v1108_v20, %v1642_v12  ;;  %v1126_v38 = vsel %vm766_vm8, %v1123_v19, %v1125_v55  ;;  %v1155_v12 = vld [vmem:[%s1415_s16] sm:$0xf0] }
 0x303   : > { %v1082_v40 = vadd.f32 %v1080_v49, %v1063_v24  ;;  %v1083_v29 = vadd.f32 %v1081_v51, %v1064_v28  ;;  %v1099_v44 = vmul.f32 %v1744_v30, %v1090_v54  ;;  %v1100_v45 = vmul.f32 %v1744_v30, %v1091_v36 }
 0x304   : > { %v1119_v61 = vmul.f32 %v1746_v31, %v1110_v3  ;;  %v1128_v37 = vmul.f32 %v1126_v38, %v1667_v33  ;;  %v1129_v30 = vmul.f32 %v1127_v56, %v1670_v34  ;;  %v1159_v42 = vrot.slane %v1155_v12, 4 }
 0x305   : > { %v1101_v59 = vadd.f32 %v1099_v44, %v1082_v40  ;;  %v1102_v60 = vadd.f32 %v1100_v45, %v1083_v29 }
 0x306   : > { %v1137_v4 = vmul.f32 %v1748_v32, %v1128_v37  ;;  %v1138_v50 = vmul.f32 %v1748_v32, %v1129_v30 }
 0x307   : > { %v1120_v62 = vadd.f32 %v1118_v52, %v1101_v59  ;;  %v1121_v9 = vadd.f32 %v1119_v61, %v1102_v60 }
 0x309   : > { %v1139_v6 = vadd.f32 %v1137_v4, %v1120_v62  ;;  %v1140_v0 = vadd.f32 %v1138_v50, %v1121_v9 }
 0x310   : > { %v1145_v2 = vpop.permute.xlu1 %1144 }
 0x311   : > { %v1147_v31 = vadd.f32 %v1145_v2, %v1139_v6  ;;  %v1148_v57 = vadd.f32 %v1145_v2, %v1140_v0 }
 0x313   : > { %v1163_v33 = vadd.f32 %v1159_v42, %v1147_v31  ;;  %v1164_v58 = vadd.f32 %v1160_v5, %v1148_v57 }
 0x315   : > { %v1167_v34 = vrot.slane %v1163_v33, 4  ;;  %v1168_v7 = vrot.slane %v1164_v58, 4 }
 0x317   : > { %1171 = vst [vmem:[%s1703_s25] sm:$0xf0] %v1167_v34  ;;  %1172 = vst [vmem:[%s1703_s25 + $0x8] sm:$0xf0] %v1168_v7 }
 0x318 PF: > { %s22_s21 = sadd.s32 1, %s1310_s21  }
 0x319   : > { %p19_p4 = scmp.ge.s32.totalorder %s22_s21, 4  }
 0x31b   :  { %21 = sbr.rel (!%p19_p4) target bundleno = 1 (0x1), region = 124 }

</bundles_post_ra>
